<compile_context>
chip_gen: v6e
topology: v6e:2x2x1
jax: 0.10.0
libtpu: 0.0.40
codegen_flags: <defaults>
</compile_context>

<pallas_src>
import functools

import jax
import jax.numpy as jnp
from jax import lax
from jax.experimental import pallas as pl
from jax.experimental.pallas import tpu as pltpu


def _round_up(x: int, m: int) -> int:
    return ((x + m - 1) // m) * m


def _router_kernel(x_ref, w_ref, b_ref, noise_ref, out_ref, idx_ref, *,
                   top_k: int, num_experts: int):
    # Single fused MXU pass: (TILE_N, C) @ (C, 2E) -> f32 (TILE_N, 2E).
    fused = jnp.dot(x_ref[...], w_ref[...],
                    preferred_element_type=jnp.float32) + b_ref[...]
    logits = fused[:, :num_experts]                        # (TILE_N, E) f32
    noise_logits = fused[:, num_experts:]                  # (TILE_N, E) f32

    # Numerically-stable softplus: max(x, 0) + log1p(exp(-|x|)).
    softplus = (jnp.maximum(noise_logits, 0.0)
                + jnp.log1p(jnp.exp(-jnp.abs(noise_logits))))

    noisy = logits + noise_ref[...] * softplus             # (TILE_N, E) f32

    n_tok, n_exp = noisy.shape
    col = lax.broadcasted_iota(jnp.int32, (n_tok, n_exp), 1)
    neg_inf = jnp.float32(-jnp.inf)

    # Iterative top-k (top_k is small and static): pick the max, record its
    # index (ties -> smallest expert id), mask it out, repeat.  Each index
    # column is stored directly -- no lane-axis concatenate at the end.
    work = noisy
    keep = jnp.zeros((n_tok, n_exp), dtype=jnp.bool_)
    for t in range(top_k):
        m = jnp.max(work, axis=-1, keepdims=True)                    # (N, 1)
        idx = jnp.min(jnp.where(work == m, col, n_exp),
                      axis=-1, keepdims=True)                        # (N, 1)
        sel = col == idx
        keep = jnp.logical_or(keep, sel)
        work = jnp.where(sel, neg_inf, work)
        idx_ref[:, t:t + 1] = idx

    # scatter(-inf outside the top-k) followed by softmax over experts.
    sparse = jnp.where(keep, noisy, neg_inf)
    mx = jnp.max(sparse, axis=-1, keepdims=True)
    e = jnp.exp(sparse - mx)                               # -inf rows -> 0
    out_ref[...] = e / jnp.sum(e, axis=-1, keepdims=True)


def noisy_topk_router(mh_output, w_route, b_route, w_noise, b_noise, noise,
                      top_k, *, tile_n=1024, matmul_dtype=jnp.bfloat16):
    """mh_output: (B, T, C); noise: (B, T, E) standard-normal draws."""
    B, T, C = mh_output.shape
    E = w_route.shape[1]
    N = B * T

    # Fuse the two routing projections into one (C, 2E) weight / (1, 2E) bias.
    w_fused = jnp.concatenate([w_route, w_noise], axis=1).astype(matmul_dtype)
    b_fused = jnp.concatenate([b_route, b_noise],
                              axis=0).reshape(1, 2 * E).astype(jnp.float32)

    x2 = mh_output.reshape(N, C).astype(matmul_dtype)
    noise2 = noise.reshape(N, E).astype(jnp.float32)

    # Token tile: large enough to approach the HBM roofline, small enough that
    # double-buffered x/noise/out blocks fit comfortably in v7x VMEM.
    tile_n = min(tile_n, _round_up(N, 8))
    n_pad = _round_up(N, tile_n)
    if n_pad != N:
        x2 = jnp.pad(x2, ((0, n_pad - N), (0, 0)))
        noise2 = jnp.pad(noise2, ((0, n_pad - N), (0, 0)))

    grid = (pl.cdiv(n_pad, tile_n),)
    kernel = functools.partial(_router_kernel, top_k=top_k, num_experts=E)

    router2, idx2 = pl.pallas_call(
        kernel,
        out_shape=(jax.ShapeDtypeStruct((n_pad, E), jnp.float32),
                   jax.ShapeDtypeStruct((n_pad, top_k), jnp.int32)),
        grid_spec=pltpu.PrefetchScalarGridSpec(
            num_scalar_prefetch=0,
            grid=grid,
            in_specs=[
                pl.BlockSpec((tile_n, C), lambda i: (i, 0)),     # x tile
                pl.BlockSpec((C, 2 * E), lambda i: (0, 0)),      # fused W
                pl.BlockSpec((1, 2 * E), lambda i: (0, 0)),      # fused b
                pl.BlockSpec((tile_n, E), lambda i: (i, 0)),     # noise tile
            ],
            out_specs=(
                pl.BlockSpec((tile_n, E), lambda i: (i, 0)),     # router probs
                pl.BlockSpec((tile_n, top_k), lambda i: (i, 0)),  # top-k idx
            ),
        ),
        compiler_params=pltpu.CompilerParams(
            dimension_semantics=("parallel",),
            vmem_limit_bytes=48 * 1024 * 1024,
        ),
    )(x2, w_fused, b_fused, noise2)

    # TODO(synk): lane-dense (128-wide) packing of the (N, E)/(N, top_k) output
    # slabs requires a bundle-dump check of the in-kernel relayout cost before
    # committing; outputs are left E-/top_k-wide (masked stores) for now.

    router2 = router2[:N].reshape(B, T, E)
    idx2 = idx2[:N].reshape(B, T, top_k)
    return router2, idx2


if __name__ == "__main__":
    # Small, deterministic setup consistent with the module.
    n_embed, num_experts, top_k = 32, 8, 2
    B, T = 2, 8

    key = jax.random.PRNGKey(0)
    k_x, k_wr, k_br, k_wn, k_bn, k_noise = jax.random.split(key, 6)

    # nn.Linear-style init: U(-1/sqrt(n_embed), 1/sqrt(n_embed)).
    bound = 1.0 / (n_embed ** 0.5)
    w_route = jax.random.uniform(k_wr, (n_embed, num_experts), jnp.float32,
                                 -bound, bound)
    b_route = jax.random.uniform(k_br, (num_experts,), jnp.float32,
                                 -bound, bound)
    w_noise = jax.random.uniform(k_wn, (n_embed, num_experts), jnp.float32,
                                 -bound, bound)
    b_noise = jax.random.uniform(k_bn, (num_experts,), jnp.float32,
                                 -bound, bound)

    mh_output = jax.random.normal(k_x, (B, T, n_embed), jnp.float32)
    # torch.randn_like(logits) equivalent, generated host-side for determinism.
    noise = jax.random.normal(k_noise, (B, T, num_experts), jnp.float32)

    router_output, indices = noisy_topk_router(
        mh_output, w_route, b_route, w_noise, b_noise, noise, top_k)
    jax.block_until_ready((router_output, indices))

    # Sanity checks: each token's weights sum to 1 with exactly top_k nonzeros,
    # and every reported index carries a nonzero probability.
    row_sums = jnp.sum(router_output, axis=-1)
    nnz = jnp.sum(router_output > 0, axis=-1)
    picked = jnp.take_along_axis(router_output, indices, axis=-1)
    assert jnp.allclose(row_sums, 1.0, atol=1e-5)
    assert bool(jnp.all(nnz == top_k))
    assert bool(jnp.all(picked > 0))
    assert indices.shape == (B, T, top_k) and indices.dtype == jnp.int32

    print("KERNEL_OK")
</pallas_src>

<mosaic_0001>
module attributes {stable_mosaic.version = 11 : i64} {
  func.func @_router_kernel(%arg0: i32, %arg1: memref<16x32xbf16, #tpu.memory_space<vmem>>, %arg2: memref<32x16xbf16, #tpu.memory_space<vmem>>, %arg3: memref<1x16xf32, #tpu.memory_space<vmem>>, %arg4: memref<16x8xf32, #tpu.memory_space<vmem>>, %arg5: memref<16x8xf32, #tpu.memory_space<vmem>>, %arg6: memref<16x2xi32, #tpu.memory_space<vmem>>) attributes {dimension_semantics = [#tpu.dimension_semantics<parallel>], iteration_bounds = array<i64: 1>, scalar_prefetch = 0 : i64, scratch_operands = 0 : i64, tpu.core_type = #tpu.core_type<tc>, window_params = [{transform_indices = @transform_0, window_bounds = array<i64: 16, 32>}, {pipeline_mode = #tpu.pipeline_mode<synchronous>, transform_indices = @transform_1, window_bounds = array<i64: 32, 16>}, {pipeline_mode = #tpu.pipeline_mode<synchronous>, transform_indices = @transform_2, window_bounds = array<i64: 1, 16>}, {transform_indices = @transform_3, window_bounds = array<i64: 16, 8>}, {transform_indices = @transform_4, window_bounds = array<i64: 16, 8>}, {transform_indices = @transform_5, window_bounds = array<i64: 16, 2>}]} {
    %c0 = arith.constant 0 : index
    %c0_0 = arith.constant 0 : index
    %0 = vector.load %arg1[%c0, %c0_0] : memref<16x32xbf16, #tpu.memory_space<vmem>>, vector<16x32xbf16>
    %c0_1 = arith.constant 0 : index
    %c0_2 = arith.constant 0 : index
    %1 = vector.load %arg2[%c0_1, %c0_2] : memref<32x16xbf16, #tpu.memory_space<vmem>>, vector<32x16xbf16>
    %cst = arith.constant dense<0.000000e+00> : vector<16x16xf32>
    %2 = tpu.matmul %0, %1, %cst {dimension_numbers = #tpu.dot_dimension_numbers<[1], [0], [0], [1], [0, 0, 1, 1], [], []>} : vector<16x32xbf16>, vector<32x16xbf16>, vector<16x16xf32> -> vector<16x16xf32>
    %c0_3 = arith.constant 0 : index
    %c0_4 = arith.constant 0 : index
    %3 = vector.load %arg3[%c0_3, %c0_4] : memref<1x16xf32, #tpu.memory_space<vmem>>, vector<1x16xf32>
    %4 = vector.broadcast %3 : vector<1x16xf32> to vector<16x16xf32>
    %5 = arith.addf %2, %4 : vector<16x16xf32>
    %6 = vector.extract_strided_slice %5 {offsets = [0, 0], sizes = [16, 8], strides = [1, 1]} : vector<16x16xf32> to vector<16x8xf32>
    %7 = vector.extract_strided_slice %5 {offsets = [0, 8], sizes = [16, 8], strides = [1, 1]} : vector<16x16xf32> to vector<16x8xf32>
    %cst_5 = arith.constant 0.000000e+00 : f32
    %8 = vector.broadcast %cst_5 : f32 to vector<16x8xf32>
    %9 = arith.maximumf %7, %8 : vector<16x8xf32>
    %10 = math.absf %7 : vector<16x8xf32>
    %cst_6 = arith.constant 0.000000e+00 : f32
    %11 = vector.broadcast %cst_6 : f32 to vector<16x8xf32>
    %12 = arith.subf %11, %10 : vector<16x8xf32>
    %13 = math.exp %12 : vector<16x8xf32>
    %14 = math.log1p %13 : vector<16x8xf32>
    %15 = arith.addf %9, %14 : vector<16x8xf32>
    %c0_7 = arith.constant 0 : index
    %c0_8 = arith.constant 0 : index
    %16 = vector.load %arg4[%c0_7, %c0_8] : memref<16x8xf32, #tpu.memory_space<vmem>>, vector<16x8xf32>
    %17 = arith.mulf %16, %15 : vector<16x8xf32>
    %18 = arith.addf %6, %17 : vector<16x8xf32>
    %19 = tpu.iota {dimensions = array<i32: 1>} : vector<16x8xi32>
    %false = arith.constant false
    %20 = vector.broadcast %false : i1 to vector<16x8xi1>
    %cst_9 = arith.constant dense<0xFF800000> : vector<16xf32>
    %21 = vector.multi_reduction <maximumf>, %18, %cst_9 [1] : vector<16x8xf32> to vector<16xf32>
    %22 = vector.shape_cast %21 : vector<16xf32> to vector<16x1xf32>
    %23 = vector.broadcast %22 : vector<16x1xf32> to vector<16x8xf32>
    %24 = arith.cmpf oeq, %18, %23 : vector<16x8xf32>
    %c8_i32 = arith.constant 8 : i32
    %25 = vector.broadcast %c8_i32 : i32 to vector<16x8xi32>
    %26 = arith.select %24, %19, %25 : vector<16x8xi1>, vector<16x8xi32>
    %cst_10 = arith.constant dense<2147483647> : vector<16xi32>
    %27 = vector.multi_reduction <minsi>, %26, %cst_10 [1] : vector<16x8xi32> to vector<16xi32>
    %28 = vector.shape_cast %27 : vector<16xi32> to vector<16x1xi32>
    %29 = vector.broadcast %28 : vector<16x1xi32> to vector<16x8xi32>
    %30 = arith.cmpi eq, %19, %29 : vector<16x8xi32>
    %31 = arith.ori %20, %30 : vector<16x8xi1>
    %cst_11 = arith.constant 0xFF800000 : f32
    %32 = vector.broadcast %cst_11 : f32 to vector<16x8xf32>
    %33 = arith.select %30, %32, %18 : vector<16x8xi1>, vector<16x8xf32>
    %c0_12 = arith.constant 0 : index
    %c0_13 = arith.constant 0 : index
    %34 = vector.load %arg6[%c0_12, %c0_13] : memref<16x2xi32, #tpu.memory_space<vmem>>, vector<16x1xi32>
    tpu.vector_store %arg6[%c0_12, %c0_13], %28 {strides = array<i32>} : memref<16x2xi32, #tpu.memory_space<vmem>>, vector<16x1xi32>,
    %cst_14 = arith.constant dense<0xFF800000> : vector<16xf32>
    %35 = vector.multi_reduction <maximumf>, %33, %cst_14 [1] : vector<16x8xf32> to vector<16xf32>
    %36 = vector.shape_cast %35 : vector<16xf32> to vector<16x1xf32>
    %37 = vector.broadcast %36 : vector<16x1xf32> to vector<16x8xf32>
    %38 = arith.cmpf oeq, %33, %37 : vector<16x8xf32>
    %c8_i32_15 = arith.constant 8 : i32
    %39 = vector.broadcast %c8_i32_15 : i32 to vector<16x8xi32>
    %40 = arith.select %38, %19, %39 : vector<16x8xi1>, vector<16x8xi32>
    %cst_16 = arith.constant dense<2147483647> : vector<16xi32>
    %41 = vector.multi_reduction <minsi>, %40, %cst_16 [1] : vector<16x8xi32> to vector<16xi32>
    %42 = vector.shape_cast %41 : vector<16xi32> to vector<16x1xi32>
    %43 = vector.broadcast %42 : vector<16x1xi32> to vector<16x8xi32>
    %44 = arith.cmpi eq, %19, %43 : vector<16x8xi32>
    %45 = arith.ori %31, %44 : vector<16x8xi1>
    %c0_17 = arith.constant 0 : index
    %c1 = arith.constant 1 : index
    %46 = vector.load %arg6[%c0_17, %c1] : memref<16x2xi32, #tpu.memory_space<vmem>>, vector<16x1xi32>
    tpu.vector_store %arg6[%c0_17, %c1], %42 {strides = array<i32>} : memref<16x2xi32, #tpu.memory_space<vmem>>, vector<16x1xi32>,
    %cst_18 = arith.constant 0xFF800000 : f32
    %47 = vector.broadcast %cst_18 : f32 to vector<16x8xf32>
    %48 = arith.select %45, %18, %47 : vector<16x8xi1>, vector<16x8xf32>
    %cst_19 = arith.constant dense<0xFF800000> : vector<16xf32>
    %49 = vector.multi_reduction <maximumf>, %48, %cst_19 [1] : vector<16x8xf32> to vector<16xf32>
    %50 = vector.shape_cast %49 : vector<16xf32> to vector<16x1xf32>
    %51 = vector.broadcast %50 : vector<16x1xf32> to vector<16x8xf32>
    %52 = arith.subf %48, %51 : vector<16x8xf32>
    %53 = math.exp %52 : vector<16x8xf32>
    %cst_20 = arith.constant dense<0.000000e+00> : vector<16xf32>
    %54 = vector.multi_reduction <add>, %53, %cst_20 [1] : vector<16x8xf32> to vector<16xf32>
    %55 = vector.shape_cast %54 : vector<16xf32> to vector<16x1xf32>
    %56 = vector.broadcast %55 : vector<16x1xf32> to vector<16x8xf32>
    %57 = arith.divf %53, %56 : vector<16x8xf32>
    %c0_21 = arith.constant 0 : index
    %c0_22 = arith.constant 0 : index
    %58 = vector.load %arg5[%c0_21, %c0_22] : memref<16x8xf32, #tpu.memory_space<vmem>>, vector<16x8xf32>
    tpu.vector_store %arg5[%c0_21, %c0_22], %57 {strides = array<i32>} : memref<16x8xf32, #tpu.memory_space<vmem>>, vector<16x8xf32>,
    return
  }
  func.func @transform_0(%arg0: i32) -> (i32, i32) {
    %c0_i32 = arith.constant 0 : i32
    %c0_i32_0 = arith.constant 0 : i32
    return %arg0, %c0_i32 : i32, i32
  }
  func.func @transform_1(%arg0: i32) -> (i32, i32) {
    %c0_i32 = arith.constant 0 : i32
    %c0_i32_0 = arith.constant 0 : i32
    %c0_i32_1 = arith.constant 0 : i32
    return %c0_i32, %c0_i32_0 : i32, i32
  }
  func.func @transform_2(%arg0: i32) -> (i32, i32) {
    %c0_i32 = arith.constant 0 : i32
    %c0_i32_0 = arith.constant 0 : i32
    %c0_i32_1 = arith.constant 0 : i32
    return %c0_i32, %c0_i32_0 : i32, i32
  }
  func.func @transform_3(%arg0: i32) -> (i32, i32) {
    %c0_i32 = arith.constant 0 : i32
    %c0_i32_0 = arith.constant 0 : i32
    return %arg0, %c0_i32 : i32, i32
  }
  func.func @transform_4(%arg0: i32) -> (i32, i32) {
    %c0_i32 = arith.constant 0 : i32
    %c0_i32_0 = arith.constant 0 : i32
    return %arg0, %c0_i32 : i32, i32
  }
  func.func @transform_5(%arg0: i32) -> (i32, i32) {
    %c0_i32 = arith.constant 0 : i32
    %c0_i32_0 = arith.constant 0 : i32
    return %arg0, %c0_i32 : i32, i32
  }
}

</mosaic_0001>

<bundles_post_ra>
// kernel: tpu_custom_call.1
= control target key start
LH: loop header
LB: loop body
LE: loop exit
PB: predicated region body
PF: predicated region fallthrough
CT: control target
= control target key end

     0   :  { %v308_v0 = vmov 0.0   ;;  %vm309_vm0 = vmmov 0   ;;  %vm50_vm1 = vcmask 261120   ;;  %vm141_vm4 = vcmask 64512   ;;  %s421_s1 = inlined_call_operand.vmem [shape: bf16[32,16], index: 1, kind: input, shape index: {}]   ;;  %s422_s0 = inlined_call_operand.vmem [shape: bf16[16,32], index: 0, kind: input, shape index: {}]   ;;  %s423_s2 = inlined_call_operand.vmem [shape: f32[1,16], index: 2, kind: input, shape index: {}]   ;;  %s424_s3 = inlined_call_operand.vmem [shape: f32[16,8], index: 3, kind: input, shape index: {}]   ;;  %s425_s5 = inlined_call_operand.vmem [shape: s32[16,2], index: 5, kind: output, shape index: {1}]   ;;  %s426_s4 = inlined_call_operand.vmem [shape: f32[16,8], index: 4, kind: output, shape index: {0}]  }
   0x1   :  { %278 = vmatprep.subr.bf16.mxu0 %v308_v0  ;;  %v289_v1 = vld [vmem:[%s421_s1 + $0x8] sm:$0xff]   ;;  %282 = vmatprep.mubr.msk.bf16.mxu0 %vm309_vm0, %v308_v0  ;;  %v290_v2 = vld [vmem:[%s421_s1] sm:$0xff]   ;;  %v139_v49 = vlaneseq  ;;  %vm186_vm9 = vcmask 7168   ;;  %vm233_vm0 = vcmask 15368  }
   0x2   :  { %279 = vmatpush3.bf16.msra.mxu0 %v289_v1  ;;  %v291_v3 = vld [vmem:[%s422_s0] sm:$0xff]   ;;  %s310_s0 = smov 120   ;;  %v126_v42 = vld [vmem:[%s424_s3 + $0x8] sm:$0xff] }
   0x3   :  { %280 = vmatprep.subr.bf16.mxu0 %v308_v0  ;;  %v270_v4 = vld [vmem:[%s423_s2] ss:$0 sm:$0xff]  ;;  %v367_v50 = vand.u32 127, %v139_v49 }
   0x4   :  { %v125_v39 = vld [vmem:[%s424_s3] sm:$0xff] }
   0x6   :  { %281 = vmatpush3.bf16.msra.mxu0 %v290_v2 }
   0x9   :  { %283 = vmatmul.mubr.msk.bf16.vlgmr.msra.gmra.mxu0 %vm50_vm1, %v291_v3 }
  0xc9   :  { %v88_v5 = vpop.f32.mrf.mxu0 }
  0xca   :  { %v89_v6 = vadd.f32 %v270_v4, %v88_v5 }
  0xcb   :  { %v284_v7 = vpop.f32.mrf.mxu0 }
  0xcc   :  { %v97_v8 = vand.u32 2147483647, %v89_v6  ;;  %v95_v29 = vmax.f32 %v89_v6, 0.0 }
  0xcd   :  { %v91_v9 = vpop.f32.mrf.mxu0 }
  0xce   :  { %v99_v10 = vsub.f32 0.0, %v97_v8  ;;  %v92_v11 = vadd.f32 %v270_v4, %v91_v9 }
  0xcf   :  { %v285_v12 = vpop.f32.mrf.mxu0 }
  0xd0   :  { %v101_v13 = vmul.f32 1.442695, %v99_v10  ;;  %v98_v14 = vand.u32 2147483647, %v92_v11  ;;  %v96_v36 = vmax.f32 %v92_v11, 0.0 }
  0xd2   :  { %292 = vpow2.f32 %v101_v13  ;;  %v100_v15 = vsub.f32 0.0, %v98_v14 }
  0xd4   :  { %v103_v16 = vmul.f32 1.442695, %v100_v15 }
  0xd6   :  { %294 = vpow2.f32 %v103_v16 }
  0xdf   :  { %v293_v17 = vpop.eup %292 }
  0xe0   :  { %v105_v18 = vadd.f32 1.0, %v293_v17  ;;  %v108_v21 = vmul.f32 -0.5, %v293_v17  ;;  %v111_v24 = vand.u32 2147483647, %v293_v17 }
  0xe2   :  { %296 = vlog2.f32 %v105_v18  ;;  %v109_v22 = vadd.f32 1.0, %v108_v21  ;;  %vm112_vm2 = vcmp.lt.f32.partialorder %v111_v24, 0.0004427343 }
  0xe3   :  { %v295_v19 = vpop.eup %294 }
  0xe4   :  { %v114_v20 = vadd.f32 1.0, %v295_v19  ;;  %v117_v23 = vmul.f32 -0.5, %v295_v19  ;;  %v110_v27 = vmul.f32 %v293_v17, %v109_v22  ;;  %v120_v30 = vand.u32 2147483647, %v295_v19 }
  0xe6   :  { %298 = vlog2.f32 %v114_v20  ;;  %v118_v28 = vadd.f32 1.0, %v117_v23  ;;  %vm121_vm3 = vcmp.lt.f32.partialorder %v120_v30, 0.0004427343 }
  0xe8   :  { %v119_v35 = vmul.f32 %v295_v19, %v118_v28 }
  0xef   :  { %v297_v25 = vpop.eup %296 }
  0xf0   :  { %v107_v26 = vmul.f32 0.6931472, %v297_v25 }
  0xf2   :  { %v113_v31 = vsel %vm112_vm2, %v110_v27, %v107_v26 }
  0xf3   :  { %v299_v32 = vpop.eup %298  ;;  %v123_v33 = vadd.f32 %v113_v31, %v95_v29 }
  0xf4   :  { %v116_v34 = vmul.f32 0.6931472, %v299_v32 }
  0xf5   :  { %129 = vrot.lane.b32.xlu0 %v123_v33, %s310_s0 }
  0xf6   :  { %v122_v37 = vsel %vm121_vm3, %v119_v35, %v116_v34 }
  0xf7   :  { %v124_v38 = vadd.f32 %v122_v37, %v96_v36 }
  0xf9   :  { %131 = vrot.lane.b32.xlu0 %v124_v38, %s310_s0 }
 0x167   :  { %v130_v40 = vpop.permute.xlu0 %129 }
 0x168   :  { %v135_v41 = vmul.f32 %v130_v40, %v125_v39 }
 0x16a   :  { %v359_v43 = vadd.f32 %v135_v41, %v89_v6 }
 0x16b   :  { %v132_v44 = vpop.permute.xlu0 %131 }
 0x16c   :  { %v136_v45 = vmul.f32 %v132_v44, %v126_v42  ;;  %v142_v46 = vsel %vm141_vm4, %v359_v43, -inf }
 0x16d   :  { %143 = vmax.xlane.f32.xlu1 %v142_v46 }
 0x16e   :  { %v363_v47 = vadd.f32 %v136_v45, %v92_v11 }
 0x170   :  { %v145_v48 = vsel %vm141_vm4, %v363_v47, -inf }
 0x171   :  { %146 = vmax.xlane.f32.xlu1 %v145_v48 }
 0x1f6   :  { %v144_v51 = vpop.xlane.xlu1 %143 }
 0x1f7   :  { %vm148_vm5 = vcmp.eq.f32.partialorder %v359_v43, %v144_v51 }
 0x1f8   :  { %v150_v52 = vsel %vm148_vm5, %v367_v50, 8 }
 0x1f9   :  { %v152_v53 = vsel %vm141_vm4, %v150_v52, 2147483647 }
 0x1fa   :  { %v147_v54 = vpop.xlane.xlu1 %146  ;;  %v154_v55 = vshra.s32 %v152_v53, 16  ;;  %v153_v61 = vand.u32 65535, %v152_v53 }
 0x1fb   :  { %vm149_vm6 = vcmp.eq.f32.partialorder %v363_v47, %v147_v54 }
 0x1fc   :  { %v151_v56 = vsel %vm149_vm6, %v367_v50, 8  ;;  %v156_v57 = vcvt.s32.f32 %v154_v55  ;;  %v155_v63 = vcvt.s32.f32 %v153_v61 }
 0x1fd   :  { %v167_v58 = vsel %vm141_vm4, %v151_v56, 2147483647 }
 0x1fe   :  { %157 = vmin.xlane.f32.xlu0 %v156_v57  ;;  %v169_v59 = vshra.s32 %v167_v58, 16  ;;  %v168_v0 = vand.u32 65535, %v167_v58 }
 0x200   :  { %v171_v60 = vcvt.s32.f32 %v169_v59  ;;  %v170_v3 = vcvt.s32.f32 %v168_v0 }
 0x202   :  { %172 = vmin.xlane.f32.xlu1 %v171_v60 }
 0x287   :  { %v158_v62 = vpop.xlane.xlu0 %157 }
 0x288   :  { %vm159_vm7 = vcmp.eq.f32.partialorder %v156_v57, %v158_v62  ;;  %v164_v5 = vcvt.f32.s32 %v158_v62 }
 0x289   :  { %v160_v1 = vsel %vm159_vm7, %v155_v63, inf }
 0x28a   :  { %161 = vmin.xlane.f32.xlu1 %v160_v1  ;;  %v165_v7 = vshll.u32 %v164_v5, 16 }
 0x28b   :  { %v173_v2 = vpop.xlane.xlu1 %172 }
 0x28c   :  { %vm174_vm8 = vcmp.eq.f32.partialorder %v171_v60, %v173_v2  ;;  %v179_v8 = vcvt.f32.s32 %v173_v2 }
 0x28d   :  { %v175_v4 = vsel %vm174_vm8, %v170_v3, inf }
 0x28e   :  { %176 = vmin.xlane.f32.xlu1 %v175_v4  ;;  %v180_v12 = vshll.u32 %v179_v8, 16 }
 0x313   :  { %v162_v6 = vpop.xlane.xlu1 %161 }
 0x314   :  { %v163_v9 = vcvt.f32.s32 %v162_v6 }
 0x316   :  { %v166_v10 = vadd.s32 %v165_v7, %v163_v9 }
 0x317   :  { %v177_v11 = vpop.xlane.xlu1 %176 }
 0x318   :  { %187 = vst.msk [vmem:[%s425_s5] sm:$0xff] %vm186_vm9, %v166_v10  ;;  %v178_v13 = vcvt.f32.s32 %v177_v11  ;;  %vm182_vm10 = vcmp.eq.s32.totalorder %v367_v50, %v166_v10 }
 0x319   :  { %v184_v14 = vsel %vm182_vm10, -inf, %v359_v43 }
 0x31a   :  { %v181_v15 = vadd.s32 %v180_v12, %v178_v13  ;;  %v189_v16 = vsel %vm141_vm4, %v184_v14, -inf }
 0x31b   :  { %190 = vmax.xlane.f32.xlu1 %v189_v16 }
 0x31c   :  { %188 = vst.msk [vmem:[%s425_s5 + $0x8] sm:$0xff] %vm186_vm9, %v181_v15  ;;  %vm183_vm11 = vcmp.eq.s32.totalorder %v367_v50, %v181_v15 }
 0x31d   :  { %v185_v17 = vsel %vm183_vm11, -inf, %v363_v47 }
 0x31e   :  { %v192_v18 = vsel %vm141_vm4, %v185_v17, -inf }
 0x31f   :  { %193 = vmax.xlane.f32.xlu1 %v192_v18 }
 0x3a4   :  { %v191_v19 = vpop.xlane.xlu1 %190 }
 0x3a5   :  { %vm195_vm12 = vcmp.eq.f32.partialorder %v184_v14, %v191_v19 }
 0x3a6   :  { %v197_v20 = vsel %vm195_vm12, %v367_v50, 8 }
 0x3a7   :  { %v199_v21 = vsel %vm141_vm4, %v197_v20, 2147483647 }
 0x3a8   :  { %v194_v22 = vpop.xlane.xlu1 %193  ;;  %v201_v23 = vshra.s32 %v199_v21, 16  ;;  %v200_v29 = vand.u32 65535, %v199_v21 }
 0x3a9   :  { %vm196_vm13 = vcmp.eq.f32.partialorder %v185_v17, %v194_v22 }
 0x3aa   :  { %v198_v24 = vsel %vm196_vm13, %v367_v50, 8  ;;  %v203_v25 = vcvt.s32.f32 %v201_v23  ;;  %v202_v31 = vcvt.s32.f32 %v200_v29 }
 0x3ab   :  { %v214_v26 = vsel %vm141_vm4, %v198_v24, 2147483647 }
 0x3ac   :  { %204 = vmin.xlane.f32.xlu1 %v203_v25  ;;  %v216_v27 = vshra.s32 %v214_v26, 16  ;;  %v215_v32 = vand.u32 65535, %v214_v26 }
 0x3ae   :  { %v218_v28 = vcvt.s32.f32 %v216_v27  ;;  %v217_v35 = vcvt.s32.f32 %v215_v32 }
 0x3b0   :  { %219 = vmin.xlane.f32.xlu1 %v218_v28 }
 0x435   :  { %v205_v30 = vpop.xlane.xlu1 %204 }
 0x436   :  { %vm206_vm14 = vcmp.eq.f32.partialorder %v203_v25, %v205_v30  ;;  %v211_v37 = vcvt.f32.s32 %v205_v30 }
 0x437   :  { %v207_v33 = vsel %vm206_vm14, %v202_v31, inf }
 0x438   :  { %208 = vmin.xlane.f32.xlu1 %v207_v33  ;;  %v212_v39 = vshll.u32 %v211_v37, 16 }
 0x439   :  { %v220_v34 = vpop.xlane.xlu1 %219 }
 0x43a   :  { %vm221_vm15 = vcmp.eq.f32.partialorder %v218_v28, %v220_v34  ;;  %v226_v40 = vcvt.f32.s32 %v220_v34 }
 0x43b   :  { %v222_v36 = vsel %vm221_vm15, %v217_v35, inf }
 0x43c   :  { %223 = vmin.xlane.f32.xlu0 %v222_v36  ;;  %v227_v45 = vshll.u32 %v226_v40, 16 }
 0x4c1   :  { %v209_v38 = vpop.xlane.xlu1 %208 }
 0x4c2   :  { %v210_v41 = vcvt.f32.s32 %v209_v38 }
 0x4c4   :  { %v213_v42 = vadd.s32 %v212_v39, %v210_v41 }
 0x4c5   :  { %v224_v44 = vpop.xlane.xlu0 %223 }
 0x4c6   :  { %234 = vst.msk [vmem:[%s425_s5] sm:$0xff] %vm233_vm0, %v213_v42  ;;  %v225_v46 = vcvt.f32.s32 %v224_v44  ;;  %vm229_vm1 = vcmp.eq.s32.totalorder %v367_v50, %v213_v42 }
 0x4c7   :  { %vm231_vm2 = vmor %vm182_vm10, %vm229_vm1 }
 0x4c8   :  { %v228_v48 = vadd.s32 %v227_v45, %v225_v46  ;;  %v236_v49 = vsel %vm231_vm2, %v359_v43, -inf }
 0x4c9   :  { %v238_v51 = vsel %vm141_vm4, %v236_v49, -inf }
 0x4ca   :  { %235 = vst.msk [vmem:[%s425_s5 + $0x8] sm:$0xff] %vm233_vm0, %v228_v48  ;;  %239 = vmax.xlane.f32.xlu1 %v238_v51  ;;  %vm230_vm3 = vcmp.eq.s32.totalorder %v367_v50, %v228_v48 }
 0x4cb   :  { %vm232_vm5 = vmor %vm183_vm11, %vm230_vm3 }
 0x4cc   :  { %v237_v52 = vsel %vm232_vm5, %v363_v47, -inf }
 0x4cd   :  { %v241_v53 = vsel %vm141_vm4, %v237_v52, -inf }
 0x4ce   :  { %242 = vmax.xlane.f32.xlu0 %v241_v53 }
 0x553   :  { %v240_v54 = vpop.xlane.xlu1 %239 }
 0x554   :  { %v244_v55 = vsub.f32 %v236_v49, %v240_v54 }
 0x556   :  { %v246_v43 = vmul.f32 1.442695, %v244_v55 }
 0x557   :  { %v243_v56 = vpop.xlane.xlu0 %242 }
 0x558   :  { %300 = vpow2.f32 %v246_v43  ;;  %v245_v57 = vsub.f32 %v237_v52, %v243_v56 }
 0x55a   :  { %v248_v58 = vmul.f32 1.442695, %v245_v57 }
 0x55c   :  { %302 = vpow2.f32 %v248_v58 }
 0x565   :  { %v301_v59 = vpop.eup %300 }
 0x566   :  { %v250_v60 = vsel %vm141_vm4, %v301_v59, 0.0 }
 0x567   :  { %251 = vadd.xlane.f32.xlu1 %v250_v60 }
 0x569   :  { %v303_v61 = vpop.eup %302 }
 0x56a   :  { %v253_v50 = vsel %vm141_vm4, %v303_v61, 0.0 }
 0x56b   :  { %254 = vadd.xlane.f32.xlu0 %v253_v50 }
 0x5f0   :  { %v252_v47 = vpop.xlane.xlu1 %251 }
 0x5f1   :  { %304 = vrcp.f32 %v252_v47 }
 0x5f4   :  { %v255_v62 = vpop.xlane.xlu0 %254 }
 0x5f5   :  { %306 = vrcp.f32 %v255_v62 }
 0x5fe   :  { %v305_v63 = vpop.eup %304 }
 0x5ff   :  { %v257_v0 = vmul.f32 %v305_v63, %v301_v59 }
 0x601   :  { %260 = vst.msk [vmem:[%s426_s4] sm:$0xff] %vm141_vm4, %v257_v0 }
 0x602   :  { %v307_v1 = vpop.eup %306 }
 0x603   :  { %v259_v2 = vmul.f32 %v307_v1, %v303_v61 }
 0x605   :  { %261 = vst.msk [vmem:[%s426_s4 + $0x8] sm:$0xff] %vm141_vm4, %v259_v2 }

</bundles_post_ra>
